<compile_context>
chip_gen: v6e
topology: v6e:2x2x1
jax: 0.10.0
libtpu: 0.0.40
codegen_flags: <defaults>
</compile_context>

<pallas_src>
import functools

import jax
import jax.numpy as jnp
from jax.experimental import pallas as pl
from jax.experimental.pallas import tpu as pltpu


def _round_up(v, m):
    return (v + m - 1) // m * m


def _pick_tile(m, tm_max, align):
    """Token-tile size: `align`-aligned, <= tm_max, and (for v7x megacore)
    yielding a grid of >= 2 steps whenever there is enough work to split."""
    m_al = _round_up(max(m, 1), align)
    t = min(_round_up(tm_max, align), m_al)
    if m_al >= 2 * align and t >= m_al:          # grid would collapse to 1 step
        t = _round_up(pl.cdiv(m_al, 2), align)   # split so both TCs get work
    return t


def _blockdiag(wb, groups):
    """Grouped conv_B weight (C, H//g) -> dense block-diagonal (C, H) (tiny)."""
    C, Hg = wb.shape
    Cg = C // groups
    wb_g = wb.reshape(groups, Cg, Hg)
    eye = jnp.eye(groups, dtype=wb.dtype)
    return jnp.einsum("gch,gk->gckh", wb_g, eye).reshape(C, groups * Hg)


# ---------------------------------------------------------------------------
# Kernels
# ---------------------------------------------------------------------------

def _lowrank_kernel(x_ref, wa_t_ref, ba_ref, wbd_t_ref, bb_ref, o_ref):
    # x_ref    : (TM, C) token-major x tile (caller dtype; cast in-kernel)
    # wa_t_ref : (C, H)  conv_A weight, transposed           (bf16)
    # ba_ref   : (1, H)  conv_A bias                          (f32)
    # wbd_t_ref: (H, C)  blockdiag(conv_B weight), transposed (bf16)
    # bb_ref   : (1, C)  conv_B bias                          (f32)
    x = x_ref[...].astype(jnp.bfloat16)                      # autocast analog
    h = jnp.dot(x, wa_t_ref[...], preferred_element_type=jnp.float32)
    h = (h + ba_ref[...]).astype(jnp.bfloat16)
    # TODO(synk): nn.Dropout(0.1) is identity in eval mode (implemented as such);
    # a training kernel would apply pltpu.prng_* dropout masking to `h` here.
    out = jnp.dot(h, wbd_t_ref[...], preferred_element_type=jnp.float32)
    o_ref[...] = (out + bb_ref[...]).astype(o_ref.dtype)


def _fused_small_kernel(x_ref, wc_ref, bc_ref, o_ref):
    # Channel-major fused (C, C) path — only used when C < 128 (weight is tiny
    # and a (C, M) layout keeps tokens lane-dense despite the narrow C).
    # x_ref : (C, TM), wc_ref : (C, C) bf16, bc_ref : (C, 1) f32.
    x = x_ref[...].astype(jnp.bfloat16)
    acc = jnp.dot(wc_ref[...], x, preferred_element_type=jnp.float32)
    o_ref[...] = (acc + bc_ref[...]).astype(o_ref.dtype)


# ---------------------------------------------------------------------------
# Wrapper
# ---------------------------------------------------------------------------

def rep_adapter_forward(x, wa, ba, wb, bb, *, groups, tm=None):
    """x: (B, N, C).  wa: (H, C), ba: (H,), wb: (C, H//groups), bb: (C,)."""
    B, N, C = x.shape
    H = wa.shape[0]
    M = B * N
    assert C % groups == 0 and H % groups == 0

    wbd = _blockdiag(wb, groups)  # (C, H) dense block-diagonal, tiny

    if tm is None:
        # ~4 MiB of bf16 activation per tile (amortizes ~0.35us/step overhead),
        # 128-aligned for the MXU, clamped to [256, 2048].
        tm = max(256, min(2048, (4 << 20) // max(C * 2, 1)))
        tm = max(128, (tm // 128) * 128)

    if C % 128 == 0:
        return _forward_token_major(x, wa, ba, wbd, bb,
                                    B=B, N=N, C=C, H=H, M=M, tm=tm)
    return _forward_channel_major(x, wa, ba, wbd, bb,
                                  B=B, N=N, C=C, H=H, M=M, tm=tm)


def _forward_token_major(x, wa, ba, wbd, bb, *, B, N, C, H, M, tm):
    """C % 128 == 0: token-major (M, C) layout, no wrapper transposes, low-rank
    two-matmul kernel."""
    wa_t = wa.T.astype(jnp.bfloat16)        # (C, H)
    wbd_t = wbd.T.astype(jnp.bfloat16)      # (H, C)
    ba_r = ba.astype(jnp.float32).reshape(1, H)
    bb_r = bb.astype(jnp.float32).reshape(1, C)

    tm = _pick_tile(M, tm, 8)               # sublane-aligned token tile
    m_pad = _round_up(M, tm)

    xm = x.reshape(M, C)                    # free reshape; NO transpose / copy
    if m_pad != M:
        xm = jnp.pad(xm, ((0, m_pad - M), (0, 0)))

    xb = jnp.dtype(x.dtype).itemsize
    cost = pl.CostEstimate(
        flops=2 * m_pad * C * H * 2,        # two low-rank matmuls
        transcendentals=0,
        bytes_accessed=m_pad * C * (xb + 2) + 4 * C * H + 4 * (C + H))

    vmem_bytes = int(
        2 * tm * C * xb        # double-buffered x tiles
        + 2 * tm * C * 2       # double-buffered out tiles (bf16)
        + 2 * tm * C * 4       # f32 accumulate / bias-add temporaries
        + 4 * C * H * 2        # wa^T + blockdiag(wb)^T (double-buffered)
        + (C + H) * 8
        + (2 << 20))           # slack
    vmem_bytes = max(16 << 20, min(vmem_bytes, 48 << 20))  # fits v7x 64 MiB/TC

    out = pl.pallas_call(
        _lowrank_kernel,
        out_shape=jax.ShapeDtypeStruct((m_pad, C), jnp.bfloat16),
        grid_spec=pltpu.PrefetchScalarGridSpec(
            num_scalar_prefetch=0,
            grid=(m_pad // tm,),
            in_specs=[
                pl.BlockSpec((tm, C), lambda i: (i, 0)),   # x tile (lane-dense)
                pl.BlockSpec((C, H), lambda i: (0, 0)),    # wa^T   (constant)
                pl.BlockSpec((1, H), lambda i: (0, 0)),    # b_A    (constant)
                pl.BlockSpec((H, C), lambda i: (0, 0)),    # wbd^T  (constant)
                pl.BlockSpec((1, C), lambda i: (0, 0)),    # b_B    (constant)
            ],
            out_specs=pl.BlockSpec((tm, C), lambda i: (i, 0)),
        ),
        compiler_params=pltpu.CompilerParams(
            dimension_semantics=("parallel",),
            vmem_limit_bytes=vmem_bytes),
        cost_estimate=cost,
    )(xm, wa_t, ba_r, wbd_t, bb_r)

    return out[:M].reshape(B, N, C)


def _forward_channel_major(x, wa, ba, wbd, bb, *, B, N, C, H, M, tm):
    """C < 128: channel-major (C, M) layout (tokens on lanes stay lane-dense),
    dense fused (C, C) map — cheap at this size."""
    wc = (wbd @ wa).astype(jnp.bfloat16)                     # (C, C), tiny
    bc = (wbd @ ba + bb).astype(jnp.float32).reshape(C, 1)   # fused bias

    tm = _pick_tile(M, tm, 128)             # lane-aligned token tile
    m_pad = _round_up(M, tm)

    x_t = x.reshape(M, C).T                 # (C, M) channel-major
    if m_pad != M:
        x_t = jnp.pad(x_t, ((0, 0), (0, m_pad - M)))

    xb = jnp.dtype(x.dtype).itemsize
    cost = pl.CostEstimate(
        flops=2 * m_pad * C * C,
        transcendentals=0,
        bytes_accessed=m_pad * C * (xb + 2) + C * C * 2 + C * 4)

    vmem_bytes = int(
        2 * tm * C * xb + 2 * tm * C * 2 + 2 * tm * C * 4
        + 2 * C * C * 2 + C * 8 + (2 << 20))
    vmem_bytes = max(16 << 20, min(vmem_bytes, 48 << 20))

    out_t = pl.pallas_call(
        _fused_small_kernel,
        out_shape=jax.ShapeDtypeStruct((C, m_pad), jnp.bfloat16),
        grid_spec=pltpu.PrefetchScalarGridSpec(
            num_scalar_prefetch=0,
            grid=(m_pad // tm,),
            in_specs=[
                pl.BlockSpec((C, tm), lambda i: (0, i)),   # x tile (tokens on lanes)
                pl.BlockSpec((C, C), lambda i: (0, 0)),    # fused weight
                pl.BlockSpec((C, 1), lambda i: (0, 0)),    # fused bias
            ],
            out_specs=pl.BlockSpec((C, tm), lambda i: (0, i)),
        ),
        compiler_params=pltpu.CompilerParams(
            dimension_semantics=("parallel",),
            vmem_limit_bytes=vmem_bytes),
        cost_estimate=cost,
    )(x_t, wc, bc)

    return out_t[:, :M].T.reshape(B, N, C)


def rep_adapter_reference(x, wa, ba, wb, bb, *, groups):
    """Pure-JAX f32 reference of the unfused grouped math, for correctness."""
    B, N, C = x.shape
    H = wa.shape[0]
    Hg, Cg = H // groups, C // groups
    h = jnp.einsum("bnc,hc->bnh", x, wa) + ba
    outs = []
    for g in range(groups):
        outs.append(jnp.einsum("bnh,ch->bnc",
                               h[..., g * Hg:(g + 1) * Hg],
                               wb[g * Cg:(g + 1) * Cg, :]))
    return jnp.concatenate(outs, axis=-1) + bb


if __name__ == "__main__":
    key = jax.random.PRNGKey(0)

    def make_params(k, C, H, groups):
        # The module's own init zeros conv_B.weight and both biases (output
        # identically zero); use non-trivial random params so the check
        # actually exercises the grouped-conv math.
        kwa, kba, kwb, kbb = jax.random.split(k, 4)
        bound = (6.0 / (C + H)) ** 0.5            # xavier_uniform_ for conv_A
        wa = jax.random.uniform(kwa, (H, C), jnp.float32, -bound, bound)
        ba = 0.1 * jax.random.normal(kba, (H,), jnp.float32)
        wb = jax.random.uniform(kwb, (C, H // groups), jnp.float32, -0.25, 0.25)
        bb = 0.1 * jax.random.normal(kbb, (C,), jnp.float32)
        return wa, ba, wb, bb

    def check(B, N, C, H, groups, k):
        kx, kp = jax.random.split(k)
        x = jax.random.normal(kx, (B, N, C), jnp.float32)
        wa, ba, wb, bb = make_params(kp, C, H, groups)
        fwd = jax.jit(functools.partial(rep_adapter_forward, groups=groups))
        out = jax.block_until_ready(fwd(x, wa, ba, wb, bb))
        ref = rep_adapter_reference(x, wa, ba, wb, bb, groups=groups)
        assert out.shape == (B, N, C)
        assert out.dtype == jnp.bfloat16
        assert jnp.allclose(out.astype(jnp.float32), ref, atol=2e-2, rtol=2e-2)

    k1, k2 = jax.random.split(key)
    # 1) token-major low-rank path (C % 128 == 0), small scaled-down shapes.
    check(B=2, N=64, C=256, H=8, groups=2, k=k1)
    # 2) channel-major fused path (C < 128).
    check(B=2, N=8, C=32, H=8, groups=2, k=k2)

    print("KERNEL_OK")
</pallas_src>

<mosaic_0001>
module attributes {stable_mosaic.version = 11 : i64} {
  func.func @_lowrank_kernel(%arg0: i32, %arg1: memref<64x256xf32, #tpu.memory_space<vmem>>, %arg2: memref<256x8xbf16, #tpu.memory_space<vmem>>, %arg3: memref<1x8xf32, #tpu.memory_space<vmem>>, %arg4: memref<8x256xbf16, #tpu.memory_space<vmem>>, %arg5: memref<1x256xf32, #tpu.memory_space<vmem>>, %arg6: memref<64x256xbf16, #tpu.memory_space<vmem>>) attributes {dimension_semantics = [#tpu.dimension_semantics<parallel>], iteration_bounds = array<i64: 2>, scalar_prefetch = 0 : i64, scratch_operands = 0 : i64, tpu.core_type = #tpu.core_type<tc>, window_params = [{transform_indices = @transform_0, window_bounds = array<i64: 64, 256>}, {pipeline_mode = #tpu.pipeline_mode<synchronous>, transform_indices = @transform_1, window_bounds = array<i64: 256, 8>}, {pipeline_mode = #tpu.pipeline_mode<synchronous>, transform_indices = @transform_2, window_bounds = array<i64: 1, 8>}, {pipeline_mode = #tpu.pipeline_mode<synchronous>, transform_indices = @transform_3, window_bounds = array<i64: 8, 256>}, {pipeline_mode = #tpu.pipeline_mode<synchronous>, transform_indices = @transform_4, window_bounds = array<i64: 1, 256>}, {transform_indices = @transform_5, window_bounds = array<i64: 64, 256>}]} {
    %c0 = arith.constant 0 : index
    %c0_0 = arith.constant 0 : index
    %0 = vector.load %arg1[%c0, %c0_0] : memref<64x256xf32, #tpu.memory_space<vmem>>, vector<64x256xf32>
    %1 = arith.truncf %0 : vector<64x256xf32> to vector<64x256xbf16>
    %c0_1 = arith.constant 0 : index
    %c0_2 = arith.constant 0 : index
    %2 = vector.load %arg2[%c0_1, %c0_2] : memref<256x8xbf16, #tpu.memory_space<vmem>>, vector<256x8xbf16>
    %cst = arith.constant dense<0.000000e+00> : vector<64x8xf32>
    %3 = tpu.matmul %1, %2, %cst {dimension_numbers = #tpu.dot_dimension_numbers<[1], [0], [0], [1], [0, 0, 1, 1], [], []>} : vector<64x256xbf16>, vector<256x8xbf16>, vector<64x8xf32> -> vector<64x8xf32>
    %c0_3 = arith.constant 0 : index
    %c0_4 = arith.constant 0 : index
    %4 = vector.load %arg3[%c0_3, %c0_4] : memref<1x8xf32, #tpu.memory_space<vmem>>, vector<1x8xf32>
    %5 = vector.broadcast %4 : vector<1x8xf32> to vector<64x8xf32>
    %6 = arith.addf %3, %5 : vector<64x8xf32>
    %7 = arith.truncf %6 : vector<64x8xf32> to vector<64x8xbf16>
    %c0_5 = arith.constant 0 : index
    %c0_6 = arith.constant 0 : index
    %8 = vector.load %arg4[%c0_5, %c0_6] : memref<8x256xbf16, #tpu.memory_space<vmem>>, vector<8x256xbf16>
    %cst_7 = arith.constant dense<0.000000e+00> : vector<64x256xf32>
    %9 = tpu.matmul %7, %8, %cst_7 {dimension_numbers = #tpu.dot_dimension_numbers<[1], [0], [0], [1], [0, 0, 1, 1], [], []>} : vector<64x8xbf16>, vector<8x256xbf16>, vector<64x256xf32> -> vector<64x256xf32>
    %c0_8 = arith.constant 0 : index
    %c0_9 = arith.constant 0 : index
    %10 = vector.load %arg5[%c0_8, %c0_9] : memref<1x256xf32, #tpu.memory_space<vmem>>, vector<1x256xf32>
    %11 = vector.broadcast %10 : vector<1x256xf32> to vector<64x256xf32>
    %12 = arith.addf %9, %11 : vector<64x256xf32>
    %13 = arith.truncf %12 : vector<64x256xf32> to vector<64x256xbf16>
    %c0_10 = arith.constant 0 : index
    %c0_11 = arith.constant 0 : index
    %14 = vector.load %arg6[%c0_10, %c0_11] : memref<64x256xbf16, #tpu.memory_space<vmem>>, vector<64x256xbf16>
    tpu.vector_store %arg6[%c0_10, %c0_11], %13 {strides = array<i32>} : memref<64x256xbf16, #tpu.memory_space<vmem>>, vector<64x256xbf16>,
    return
  }
  func.func @transform_0(%arg0: i32) -> (i32, i32) {
    %c0_i32 = arith.constant 0 : i32
    %c0_i32_0 = arith.constant 0 : i32
    return %arg0, %c0_i32 : i32, i32
  }
  func.func @transform_1(%arg0: i32) -> (i32, i32) {
    %c0_i32 = arith.constant 0 : i32
    %c0_i32_0 = arith.constant 0 : i32
    %c0_i32_1 = arith.constant 0 : i32
    return %c0_i32, %c0_i32_0 : i32, i32
  }
  func.func @transform_2(%arg0: i32) -> (i32, i32) {
    %c0_i32 = arith.constant 0 : i32
    %c0_i32_0 = arith.constant 0 : i32
    %c0_i32_1 = arith.constant 0 : i32
    return %c0_i32, %c0_i32_0 : i32, i32
  }
  func.func @transform_3(%arg0: i32) -> (i32, i32) {
    %c0_i32 = arith.constant 0 : i32
    %c0_i32_0 = arith.constant 0 : i32
    %c0_i32_1 = arith.constant 0 : i32
    return %c0_i32, %c0_i32_0 : i32, i32
  }
  func.func @transform_4(%arg0: i32) -> (i32, i32) {
    %c0_i32 = arith.constant 0 : i32
    %c0_i32_0 = arith.constant 0 : i32
    %c0_i32_1 = arith.constant 0 : i32
    return %c0_i32, %c0_i32_0 : i32, i32
  }
  func.func @transform_5(%arg0: i32) -> (i32, i32) {
    %c0_i32 = arith.constant 0 : i32
    %c0_i32_0 = arith.constant 0 : i32
    return %arg0, %c0_i32 : i32, i32
  }
}

</mosaic_0001>

<bundles_post_ra>
// kernel: rep_adapter_forward.1
= control target key start
LH: loop header
LB: loop body
LE: loop exit
PB: predicated region body
PF: predicated region fallthrough
CT: control target
= control target key end

     0   :  { %10 = vsyncpa [#allocation3], 0  ;;  %s1275_s0 = inlined_call_operand.hbm [shape: f32[128,256], index: 0, kind: input, shape index: {}]   ;;  %s1276_s1 = inlined_call_operand.vmem [shape: bf16[256,8], index: 1, kind: input, shape index: {}]   ;;  %s1277_s2 = inlined_call_operand.vmem [shape: f32[1,8], index: 2, kind: input, shape index: {}]   ;;  %s1278_s3 = inlined_call_operand.vmem [shape: bf16[8,256], index: 3, kind: input, shape index: {}]   ;;  %s1279_s4 = inlined_call_operand.vmem [shape: f32[1,256], index: 4, kind: input, shape index: {}]   ;;  %s1280_s5 = inlined_call_operand.hbm [shape: bf16[128,256], index: 5, kind: output, shape index: {}]  }
   0x1   :  { %12 = vsyncpa [#allocation3 + $0x1], 0 }
   0x2   :  { %13 = vsyncpa [#allocation4], 0 }
   0x3   :  { %15 = vsyncpa [#allocation4 + $0x1], 0  ;;  %s1030_s18 = smov 0   ;;  %s1032_s19 = smov 0  }
   0x4   :  { %s1034_s20 = smov 0   ;;  %s1036_s21 = smov 0  }
   0x5 LB: > { %s1051_s22 = sadd.s32 4294967295, %s991_s21   ;;  %s730_s23 = sadd.s32 4294967294, %s991_s21   ;;  %s991_s21 = sphi %s1036_s21, %s1295_s21   ;;  %s987_s20 = sphi %s1034_s20, %s1294_s20   ;;  %s983_s19 = sphi %s1032_s19, %s1293_s19   ;;  %s979_s18 = sphi %s1030_s18, %s1292_s18  }
   0x6   : > { %s1055_s24 = sadd.s32 1, %s991_s21   ;;  %s28_s25 = sadd.s32 1, %s987_s20 }
   0x7   : > { %s25_s26 = ssub.s32 %s991_s21, %s1055_s24  ;;  %p35_p0 = scmp.ne.s32.totalorder %s987_s20, %s983_s19 }
   0x8   : > { %p26_p1 = scmp.eq.s32.totalorder %s25_s26, 0  ;;  %p36_p2 = scmp.eq.s32.totalorder %s991_s21, 0 }
   0x9   : > { %p41_p3 = scmp.ne.s32.totalorder %s983_s19, %s979_s18  ;;  %p42_p4 = scmp.eq.s32.totalorder %s1051_s22, 0 }
   0xa   : > { %s1067_s27 = scalar_select %p26_p1, %s987_s20, %s28_s25  }
   0xb   : > { %p1069_p5 = por %p36_p2, %p35_p0  ;;  %p1073_p6 = por %p42_p4, %p41_p3 }
   0xc   : > { %p149_p7 = scmp.eq.s32.totalorder %s1051_s22, 1  ;;  %p155_p8 = scmp.eq.s32.totalorder %s730_s23, 1 }
   0xd   : > { %s1284_s29 = scalar_select %p1073_p6, 1, 0 }
   0xe   : > { %p842_p10 = scmp.lt.s32.totalorder %s991_s21, 2  ;;  %p1080_p11 = por %p149_p7, %p35_p0 }
   0xf   : > { %p1084_p12 = por %p155_p8, %p41_p3  ;;  %s187_s7 = sand.u32 1, %s987_s20  }
  0x10   : > { %s1285_s30 = scalar_select %p1080_p11, 1, 0 }
  0x11   : > { %s1286_s6 = scalar_select %p1084_p12, 1, 0 }
  0x12   : > { %s779_s8 = sshll.u32 %s991_s21, 11  ;;  %s733_s9 = sshll.u32 %s187_s7, 7 }
  0x13   : > { %s1093_s12 = scalar_lea.hbm %s1275_s0, %s779_s8  ;;  %s191_s13 = scalar_lea.vmem [#allocation2], %s733_s9 }
  0x14   : > { %s199_s14 = sshll.u32 %s191_s13, 4  ;;  %p1097_p13 = pnand %p842_p10, %p1069_p5  ;;  %s1101_s14 = int_to_ptr.vmem [resolvable:$true] %s199_s14 }
  0x15   : > { %s1103_s16 = scalar_lea.sflag [#allocation3], %s187_s7  ;;  %s899_s17 = scalar_lea.hbm %s1093_s12, 2048 }
  0x16   : > { %p900_p0 = scmp.ne.s32.totalorder %s1093_s12, %s899_s17  ;;  %p901_p1 = pneg %p1097_p13 }
  0x17   : > { %s904_s26 = scalar_lea.hbm %s1275_s0, 4096  ;;  %p905_p4 = scmp.lt.s32.totalorder %s1093_s12, %s1275_s0 }
  0x18   : > { %p902_p2 = pnand %p901_p1, %p900_p0  ;;  %p906_p5 = scmp.lt.s32.totalorder %s904_s26, %s899_s17 }
  0x1a   : > { %p903_p3 = pneg %p902_p2  ;;  %p907_p7 = por %p906_p5, %p905_p4 }
  0x1c   : > { %p908_p8 = pnand %p907_p7, %p903_p3 }
  0x1e   : > { %911 = shalt.err (!%p908_p8)
}
  0x1f   : > { %s912_s7 = scalar_lea.vmem %s1101_s14, 2048  ;;  %s993_s9 = smov [#allocation2]  }
  0x20   : > { %p913_p10 = scmp.ne.s32.totalorder %s1101_s14, %s912_s7  ;;  %s917_s10 = sshll.u32 %s993_s9, 4  ;;  %s918_s10 = int_to_ptr.vmem [resolvable:$false] %s917_s10 }
  0x21   : > { %s919_s11 = scalar_lea.vmem %s918_s10, 4096  ;;  %p920_p2 = scmp.lt.s32.totalorder %s1101_s14, %s918_s10 }
  0x22   : > { %p915_p9 = pnand %p913_p10, %p901_p1  ;;  %p921_p12 = scmp.lt.s32.totalorder %s919_s11, %s912_s7 }
  0x24   : > { %p916_p0 = pneg %p915_p9  ;;  %p922_p11 = por %p921_p12, %p920_p2 }
  0x26   : > { %p923_p6 = pnand %p922_p11, %p916_p0 }
  0x28   : > { %926 = shalt.err (!%p923_p6)
}
  0x29   : > { %s994_s13 = smov 256   ;;  %s995_s17 = smov 16  }
  0x2a   : > { %837 = dma.hbm_to_vmem [thread:$0]  (!%p1097_p13), %s1093_s12, 2048, %s1101_s14, %s1103_s16, %s994_s13, %s994_s13, %s995_s17  }
  0x2b   : > { %p737_p9 = scmp.ge.s32.totalorder %s991_s21, 1  ;;  %p207_p1 = scmp.lt.s32.totalorder %s991_s21, 3 }
  0x2d   : > { %p208_p3 = pnand %p737_p9, %p207_p1 }
  0x2e   : > { %s1127_s23 = sand.u32 (!%p208_p3), 1, %s983_s19   ;;  %p1288_p6 = scmp.ne.s32.totalorder (!%p208_p3), %s1284_s29, 0 }
  0x2f   : > { %211 = sbr.rel (%p208_p3) target bundleno = 532 (0x214), region = 40  ;;  %s738_s25 = sshll.u32 (!%p208_p3), %s1127_s23, 7 }
  0x30   : > { %s214_s26 = scalar_lea.sflag (!%p208_p3), [#allocation3], %s1127_s23  ;;  %s1131_s28 = scalar_lea.vmem (!%p208_p3), [#allocation2], %s738_s25 }
  0x34   : > { %970 = dma.done.wait (%p1288_p6), %s214_s26, 2048  }
  0x35   : > { %972 = vsyncadd (%p1288_p6), %s214_s26, 4294965248  ;;  %v881_v0 = vld [vmem:[%s1276_s1 + $0x78] sm:$0xff]   ;;  %v883_v2 = vld [vmem:[%s1276_s1 + $0x70] sm:$0xff]   ;;  %vm506_vm0 = vcmask 1043456   ;;  %v996_v44 = vmov 0   ;;  %vm493_vm1 = vcmask 64512  }
  0x36   : > { %v882_v1 = vld [vmem:[%s1276_s1 + $0x38] sm:$0xff]   ;;  %790 = vmatprep.subr.bf16.mxu0 %v881_v0  ;;  %v884_v3 = vld [vmem:[%s1276_s1 + $0x30] sm:$0xff]   ;;  %v885_v4 = vld [vmem:[%s1276_s1 + $0x68] sm:$0xff]   ;;  %545 = vmatprep.mubr.bf16.mxu1 %v996_v44  ;;  %s739_s11 = sshll.u32 %s1127_s23, 6  ;;  %s789_s25 = sshll.u32 %s1051_s22, 10 }
  0x37   : > { %791 = vmatpush3.bf16.msra.mxu0 %v882_v1  ;;  %v886_v5 = vld [vmem:[%s1276_s1 + $0x28] sm:$0xff]   ;;  %v887_v6 = vld [vmem:[%s1276_s1 + $0x60] sm:$0xff]   ;;  %v889_v8 = vld [vmem:[%s1276_s1 + $0x58] sm:$0xff]   ;;  %s1215_s13 = scalar_lea.vmem [#allocation5], %s739_s11  ;;  %s1231_s14 = scalar_lea.hbm %s1280_s5, %s789_s25 }
  0x38   : > { %792 = vmatprep.subr.bf16.mxu0 %v883_v2  ;;  %v888_v7 = vld [vmem:[%s1276_s1 + $0x20] sm:$0xff]   ;;  %v890_v9 = vld [vmem:[%s1276_s1 + $0x18] sm:$0xff]   ;;  %v891_v10 = vld [vmem:[%s1276_s1 + $0x50] sm:$0xff]   ;;  %s657_s17 = sshll.u32 %s1215_s13, 4  ;;  %s643_s15 = scalar_lea.sflag [#allocation4], %s1127_s23  ;;  %s1225_s17 = int_to_ptr.vmem [resolvable:$true] %s657_s17 }
  0x39   : > { %v248_v11 = vld [vmem:[%s1131_s28 + $0x8] sm:$0xff]  ;;  %v250_v12 = vld [vmem:[%s1131_s28 + $0x18] sm:$0xff]  ;;  %v892_v14 = vld [vmem:[%s1276_s1 + $0x10] sm:$0xff]   ;;  %s927_s16 = scalar_lea.vmem %s1225_s17, 1024  ;;  %p1289_p12 = scmp.ne.s32.totalorder %s1285_s30, 0 }
  0x3a   : > { %v264_v13 = vpack.c.bf16 %v250_v12, %v248_v11  ;;  %v893_v15 = vld [vmem:[%s1276_s1 + $0x48] sm:$0xff]   ;;  %v895_v17 = vld [vmem:[%s1276_s1 + $0x40] sm:$0xff]   ;;  %v249_v20 = vld [vmem:[%s1131_s28 + $0x10] sm:$0xff]  ;;  %p928_p11 = scmp.ne.s32.totalorder %s1225_s17, %s927_s16  ;;  %s997_s22 = smov [#allocation5]  }
  0x3b   : > { %793 = vmatpush3.bf16.msra.mxu0 %v884_v3  ;;  %v894_v16 = vld [vmem:[%s1276_s1 + $0x8] sm:$0xff]   ;;  %v896_v18 = vld [vmem:[%s1276_s1] sm:$0xff]   ;;  %v254_v22 = vld [vmem:[%s1131_s28 + $0x38] sm:$0xff]  ;;  %s931_s8 = sshll.u32 %s997_s22, 4  ;;  %s932_s8 = int_to_ptr.vmem [resolvable:$false] %s931_s8 }
  0x3c   : > { %794 = vmatprep.subr.bf16.mxu0 %v885_v4  ;;  %438 = vmatprep.mubr.bf16.mxu0 %v264_v13  ;;  %v247_v19 = vld [vmem:[%s1131_s28] sm:$0xff]  ;;  %v252_v21 = vld [vmem:[%s1131_s28 + $0x28] sm:$0xff]  ;;  %v253_v26 = vld [vmem:[%s1131_s28 + $0x30] sm:$0xff]  ;;  %p929_p13 = pnand %p928_p11, %p1289_p12  ;;  %s933_s7 = scalar_lea.vmem %s932_s8, 2048 }
  0x3d   : > { %v263_v23 = vpack.c.bf16 %v249_v20, %v247_v19  ;;  %v266_v24 = vpack.c.bf16 %v254_v22, %v252_v21  ;;  %v251_v25 = vld [vmem:[%s1131_s28 + $0x20] sm:$0xff]  ;;  %v256_v27 = vld [vmem:[%s1131_s28 + $0x48] sm:$0xff]  ;;  %v258_v28 = vld [vmem:[%s1131_s28 + $0x58] sm:$0xff]  ;;  %p934_p5 = scmp.lt.s32.totalorder %s1225_s17, %s932_s8  ;;  %p935_p7 = scmp.lt.s32.totalorder %s933_s7, %s927_s16 }
  0x3e   : > { %v265_v29 = vpack.c.bf16 %v253_v26, %v251_v25  ;;  %v268_v30 = vpack.c.bf16 %v258_v28, %v256_v27  ;;  %v255_v31 = vld [vmem:[%s1131_s28 + $0x40] sm:$0xff]  ;;  %v257_v32 = vld [vmem:[%s1131_s28 + $0x50] sm:$0xff]  ;;  %v260_v33 = vld [vmem:[%s1131_s28 + $0x68] sm:$0xff]  ;;  %p930_p4 = pneg %p929_p13 }
  0x3f   : > { %795 = vmatpush3.bf16.msra.mxu0 %v886_v5  ;;  %v262_v34 = vld [vmem:[%s1131_s28 + $0x78] sm:$0xff]  ;;  %v267_v35 = vpack.c.bf16 %v257_v32, %v255_v31  ;;  %v259_v37 = vld [vmem:[%s1131_s28 + $0x60] sm:$0xff]  ;;  %v261_v38 = vld [vmem:[%s1131_s28 + $0x70] sm:$0xff]  ;;  %p936_p8 = por %p935_p7, %p934_p5 }
  0x40   : > { %796 = vmatprep.subr.bf16.mxu0 %v887_v6  ;;  %v270_v36 = vpack.c.bf16 %v262_v34, %v260_v33  ;;  %v269_v39 = vpack.c.bf16 %v261_v38, %v259_v37  ;;  %v475_v40 = vld [vmem:[%s1278_s3] sm:$0xff] }
  0x41   : > { %v758_v41 = vcombine.high %v475_v40, %v475_v40  ;;  %v757_v42 = vcombine.low %v475_v40, %v475_v40  ;;  %v740_v49 = vld [vmem:[%s1277_s2] ss:$0 sm:$0xff]  ;;  %p937_p10 = pnand %p936_p8, %p930_p4 }
  0x42   : > { %v476_v22 = vld [vmem:[%s1279_s4] sm:$0x3] }
  0x43   : > { %797 = vmatpush3.bf16.msra.mxu0 %v888_v7  ;;  %759 = vmatprep.subr.msk.bf16.mxu1 %vm506_vm0, %v758_v41  ;;  %v508_v43 = vsel %vm506_vm0, %v757_v42, 0 }
  0x44   : > { %798 = vmatprep.subr.bf16.mxu0 %v889_v8  ;;  %528 = vmatpush1.bf16.msra.mxu1 %v508_v43 }
  0x47   : > { %799 = vmatpush3.bf16.msra.mxu0 %v890_v9 }
  0x48   : > { %800 = vmatprep.subr.bf16.mxu0 %v891_v10 }
  0x4b   : > { %801 = vmatpush3.bf16.msra.mxu0 %v892_v14 }
  0x4c   : > { %802 = vmatprep.subr.bf16.mxu0 %v893_v15 }
  0x4f   : > { %803 = vmatpush3.bf16.msra.mxu0 %v894_v16 }
  0x50   : > { %804 = vmatprep.subr.bf16.mxu0 %v895_v17 }
  0x53   : > { %805 = vmatpush3.bf16.msra.mxu0 %v896_v18  ;;  %v478_v18 = vlaneseq }
  0x55   : > { %v479_v19 = vshrl.u32 %v478_v18, 7 }
  0x56   : > { %439 = vmatmul.mubr.bf16.vlgmr.msra.gmra.mxu0 %v263_v23 }
  0x57   : > { %446 = vmatprep.mubr.bf16.mxu0 %v266_v24  ;;  %v480_v20 = vsub.s32 0, %v479_v19  ;;  %v484_v21 = vsub.s32 1, %v479_v19 }
  0x59   : > { %v481_v23 = vrot.slane %v476_v22, %v480_v20  ;;  %v485_v24 = vrot.slane %v476_v22, %v484_v21 }
  0x5e   : > { %447 = vmatmul.mubr.bf16.gmra.mxu0 %v265_v29 }
  0x5f   : > { %454 = vmatprep.mubr.bf16.mxu0 %v268_v30 }
  0x66   : > { %455 = vmatmul.mubr.bf16.gmra.mxu0 %v267_v35 }
  0x67   : > { %462 = vmatprep.mubr.bf16.mxu0 %v270_v36 }
  0x6e   : > { %463 = vmatmul.mubr.bf16.gmra.mxu0 %v269_v39 }
 0x116   : > { %v806_v45 = vpop.f32.mrf.mxu0 }
 0x118   : > { %v807_v46 = vpop.f32.mrf.mxu0 }
 0x119   : > { %v808_v48 = vadd.f32 %v807_v46, %v806_v45 }
 0x11a   : > { %v809_v47 = vpop.f32.mrf.mxu0 }
 0x11b   : > { %v441_v53 = vadd.f32 %v808_v48, %v740_v49 }
 0x11c   : > { %v810_v50 = vpop.f32.mrf.mxu0 }
 0x11d   : > { %v811_v51 = vadd.f32 %v810_v50, %v809_v47 }
 0x11e   : > { %v812_v52 = vpop.f32.mrf.mxu0 }
 0x11f   : > { %v444_v54 = vadd.f32 %v811_v51, %v740_v49 }
 0x120   : > { %v813_v55 = vpop.f32.mrf.mxu0 }
 0x121   : > { %v471_v56 = vpack.c.bf16 %v444_v54, %v441_v53  ;;  %v814_v58 = vadd.f32 %v813_v55, %v812_v52 }
 0x122   : > { %v815_v57 = vpop.f32.mrf.mxu0 }
 0x123   : > { %760 = vmatmul.mubr.msk.bf16.vlgmr.msra.gmra.mxu1 %vm493_vm1, %v471_v56  ;;  %v449_v62 = vadd.f32 %v814_v58, %v740_v49 }
 0x124   : > { %v816_v59 = vpop.f32.mrf.mxu0  ;;  %555 = vmatprep.mubr.bf16.mxu1 %v996_v44 }
 0x125   : > { %v817_v60 = vadd.f32 %v816_v59, %v815_v57 }
 0x126   : > { %v818_v61 = vpop.f32.mrf.mxu0 }
 0x127   : > { %v452_v63 = vadd.f32 %v817_v60, %v740_v49 }
 0x128   : > { %v819_v0 = vpop.f32.mrf.mxu0 }
 0x129   : > { %v472_v1 = vpack.c.bf16 %v452_v63, %v449_v62  ;;  %v820_v3 = vadd.f32 %v819_v0, %v818_v61 }
 0x12a   : > { %v821_v2 = vpop.f32.mrf.mxu0 }
 0x12b   : > { %761 = vmatmul.mubr.msk.bf16.gmra.mxu1 %vm493_vm1, %v472_v1  ;;  %v457_v7 = vadd.f32 %v820_v3, %v740_v49 }
 0x12c   : > { %v822_v4 = vpop.f32.mrf.mxu0  ;;  %565 = vmatprep.mubr.bf16.mxu1 %v996_v44 }
 0x12d   : > { %v823_v5 = vadd.f32 %v822_v4, %v821_v2 }
 0x12e   : > { %v824_v6 = vpop.f32.mrf.mxu0 }
 0x12f   : > { %v460_v8 = vadd.f32 %v823_v5, %v740_v49 }
 0x130   : > { %v825_v9 = vpop.f32.mrf.mxu0 }
 0x131   : > { %v473_v10 = vpack.c.bf16 %v460_v8, %v457_v7  ;;  %v826_v12 = vadd.f32 %v825_v9, %v824_v6 }
 0x132   : > { %v827_v11 = vpop.f32.mrf.mxu0 }
 0x133   : > { %762 = vmatmul.mubr.msk.bf16.gmra.mxu1 %vm493_vm1, %v473_v10  ;;  %v465_v15 = vadd.f32 %v826_v12, %v740_v49 }
 0x134   : > { %v828_v13 = vpop.f32.mrf.mxu0  ;;  %575 = vmatprep.mubr.bf16.mxu1 %v996_v44 }
 0x135   : > { %v829_v14 = vadd.f32 %v828_v13, %v827_v11 }
 0x137   : > { %v468_v16 = vadd.f32 %v829_v14, %v740_v49 }
 0x139   : > { %v474_v17 = vpack.c.bf16 %v468_v16, %v465_v15 }
 0x13b   : > { %763 = vmatmul.mubr.msk.bf16.gmra.mxu1 %vm493_vm1, %v474_v17 }
 0x1e3   : > { %v547_v25 = vpop.f32.mrf.mxu1 }
 0x1e4   : > { %v548_v27 = vadd.f32 %v547_v25, %v481_v23 }
 0x1e5   : > { %v549_v26 = vpop.f32.mrf.mxu1 }
 0x1e6   : > { %v550_v28 = vadd.f32 %v549_v26, %v485_v24 }
 0x1e7   : > { %v551_v29 = vpop.f32.mrf.mxu1 }
 0x1e8   : > { %v780_v30 = vpack.c.bf16 %v550_v28, %v548_v27  ;;  %v552_v32 = vadd.f32 %v551_v29, %v481_v23 }
 0x1e9   : > { %v553_v31 = vpop.f32.mrf.mxu1 }
 0x1ea   : > { %634 = vst [vmem:[%s1215_s13] sm:$0xff] %v780_v30  ;;  %v554_v33 = vadd.f32 %v553_v31, %v485_v24 }
 0x1eb   : > { %v557_v34 = vpop.f32.mrf.mxu1 }
 0x1ec   : > { %v781_v35 = vpack.c.bf16 %v554_v33, %v552_v32  ;;  %v558_v37 = vadd.f32 %v557_v34, %v481_v23 }
 0x1ed   : > { %v559_v36 = vpop.f32.mrf.mxu1 }
 0x1ee   : > { %635 = vst [vmem:[%s1215_s13 + $0x8] sm:$0xff] %v781_v35  ;;  %v560_v38 = vadd.f32 %v559_v36, %v485_v24 }
 0x1ef   : > { %v561_v39 = vpop.f32.mrf.mxu1 }
 0x1f0   : > { %v782_v40 = vpack.c.bf16 %v560_v38, %v558_v37  ;;  %v562_v42 = vadd.f32 %v561_v39, %v481_v23 }
 0x1f1   : > { %v563_v41 = vpop.f32.mrf.mxu1 }
 0x1f2   : > { %636 = vst [vmem:[%s1215_s13 + $0x10] sm:$0xff] %v782_v40  ;;  %v564_v43 = vadd.f32 %v563_v41, %v485_v24 }
 0x1f3   : > { %v567_v44 = vpop.f32.mrf.mxu1 }
 0x1f4   : > { %v783_v45 = vpack.c.bf16 %v564_v43, %v562_v42  ;;  %v568_v47 = vadd.f32 %v567_v44, %v481_v23 }
 0x1f5   : > { %v569_v46 = vpop.f32.mrf.mxu1 }
 0x1f6   : > { %637 = vst [vmem:[%s1215_s13 + $0x18] sm:$0xff] %v783_v45  ;;  %v570_v48 = vadd.f32 %v569_v46, %v485_v24 }
 0x1f7   : > { %v571_v49 = vpop.f32.mrf.mxu1 }
 0x1f8   : > { %v784_v50 = vpack.c.bf16 %v570_v48, %v568_v47  ;;  %v572_v52 = vadd.f32 %v571_v49, %v481_v23 }
 0x1f9   : > { %v573_v51 = vpop.f32.mrf.mxu1 }
 0x1fa   : > { %638 = vst [vmem:[%s1215_s13 + $0x20] sm:$0xff] %v784_v50  ;;  %v574_v53 = vadd.f32 %v573_v51, %v485_v24 }
 0x1fb   : > { %v577_v54 = vpop.f32.mrf.mxu1 }
 0x1fc   : > { %v785_v55 = vpack.c.bf16 %v574_v53, %v572_v52  ;;  %v578_v57 = vadd.f32 %v577_v54, %v481_v23 }
 0x1fd   : > { %v579_v56 = vpop.f32.mrf.mxu1 }
 0x1fe   : > { %639 = vst [vmem:[%s1215_s13 + $0x28] sm:$0xff] %v785_v55  ;;  %v580_v58 = vadd.f32 %v579_v56, %v485_v24 }
 0x1ff   : > { %v581_v59 = vpop.f32.mrf.mxu1 }
 0x200   : > { %v786_v60 = vpack.c.bf16 %v580_v58, %v578_v57  ;;  %v582_v62 = vadd.f32 %v581_v59, %v481_v23 }
 0x201   : > { %v583_v61 = vpop.f32.mrf.mxu1 }
 0x202   : > { %640 = vst [vmem:[%s1215_s13 + $0x30] sm:$0xff] %v786_v60  ;;  %v584_v63 = vadd.f32 %v583_v61, %v485_v24 }
 0x204   : > { %v787_v0 = vpack.c.bf16 %v584_v63, %v582_v62 }
 0x206   : > { %641 = vst [vmem:[%s1215_s13 + $0x38] sm:$0xff] %v787_v0 }
 0x207   : > { %940 = shalt.err (!%p937_p10)
}
 0x208   : > { %s941_s9 = scalar_lea.hbm %s1231_s14, 1024  ;;  %s945_s29 = scalar_lea.hbm %s1280_s5, 2048 }
 0x209   : > { %p942_p0 = scmp.ne.s32.totalorder %s1231_s14, %s941_s9  ;;  %p946_p1 = scmp.lt.s32.totalorder %s1231_s14, %s1280_s5 }
 0x20a   : > { %p947_p3 = scmp.lt.s32.totalorder %s945_s29, %s941_s9 }
 0x20b   : > { %p943_p2 = pnand %p942_p0, %p1289_p12 }
 0x20c   : > { %p948_p6 = por %p947_p3, %p946_p1 }
 0x20d   : > { %p944_p9 = pneg %p943_p2 }
 0x20f   : > { %p949_p11 = pnand %p948_p6, %p944_p9 }
 0x211   : > { %952 = shalt.err (!%p949_p11)
}
 0x212   : > { %s998_s25 = smov 128   ;;  %s999_s26 = smov 8  }
 0x213   : > { %832 = dma.vmem_to_hbm [thread:$0]  (%p1289_p12), %s1225_s17, 1024, %s1231_s14, %s643_s15, %s998_s25, %s998_s25, %s999_s26  }
 0x214 PF: > { %s672_s12 = sand.u32 1, %s979_s18   ;;  %p1290_p13 = scmp.ne.s32.totalorder %s1286_s6, 0 }
 0x215   : > { %p1291_p4 = scmp.ge.s32.totalorder %s991_s21, 2  ;;  %s673_s16 = scalar_lea.sflag [#allocation4], %s672_s12 }
 0x217   : > { %p839_p5 = pnand %p1291_p4, %p1290_p13 }
 0x219   : > { %p840_p7 = pneg %p839_p5 }
 0x21b   : > { %974 = dma.done.wait (%p840_p7), %s673_s16, 1024  }
 0x21c   : > { %976 = vsyncadd (%p840_p7), %s673_s16, 4294966272  ;;  %p18_p8 = scmp.ge.s32.totalorder %s1055_s24, 4   ;;  %s1292_s18 = smov %s983_s19 }
 0x21d   : > { %s1293_s19 = smov %s987_s20  ;;  %s1294_s20 = smov %s1067_s27 }
 0x21e   : > { %s1295_s21 = smov %s1055_s24  ;;  %20 = sbr.rel (!%p18_p8) target bundleno = 5 (0x5), region = 85 }
 0x223   :  { %678 = vsyncpa [#allocation3], 1 }
 0x224   :  { %680 = vsyncpa [#allocation3 + $0x1], 1 }
 0x225   :  { %681 = vsyncpa [#allocation4], 1 }
 0x226   :  { %683 = vsyncpa [#allocation4 + $0x1], 1 }

</bundles_post_ra>
